<compile_context>
chip_gen: v6e
topology: v6e:2x2x1
jax: 0.10.0
libtpu: 0.0.40
codegen_flags: <defaults>
</compile_context>

<pallas_src>
import functools
import math

import jax
import jax.numpy as jnp
from jax.experimental import pallas as pl
from jax.experimental.pallas import tpu as pltpu


def _round_up(n: int, m: int) -> int:
    return ((n + m - 1) // m) * m


def _pick_tile(n: int, max_tile: int, align: int) -> int:
    """Largest multiple of `align` <= max_tile that divides n, else n (full dim)."""
    if n <= max_tile:
        return n
    t = (max_tile // align) * align
    while t >= align:
        if n % t == 0:
            return t
        t -= align
    return n


@functools.lru_cache(maxsize=None)
def _vmem_capacity_bytes() -> int:
    try:
        return int(pltpu.get_tpu_info().vmem_capacity_bytes)
    except Exception:  # conservative fallback: v5e/v6e capacity
        return 128 * 1024 * 1024


# ---------------------------------------------------------------------------
# Kernel 1: fused Q/K/V projection (1x1 Conv1d), channels-first input.
#   x_ref: (D, tl) NCL slab; w_ref: (3, D_in, D_out) bf16 head-major;
#   b_ref: (3, 1, D_out) f32.  MXU contracts axis 0 of both x and w, so the
#   NCL->NLC layout change rides the matmul (no separate transpose pass).
# ---------------------------------------------------------------------------
def _qkv_proj_kernel(q_ref, k_ref, v_ref, w_ref, b_ref, qo_ref, ko_ref, vo_ref):
    for i, (x_ref, o_ref) in enumerate(
            ((q_ref, qo_ref), (k_ref, ko_ref), (v_ref, vo_ref))):
        x = x_ref[...].astype(jnp.bfloat16)                          # (D, tl)
        y = jax.lax.dot_general(x, w_ref[i], (((0,), (0,)), ((), ())),
                                preferred_element_type=jnp.float32)  # (tl, D)
        o_ref[...] = (y + b_ref[i]).astype(o_ref.dtype)


def qkv_project_pallas(query, key, value, w, b, out_dtype=jnp.bfloat16,
                       max_tile=512):
    """query/key/value: (B, D, L) channels-first; w: (3, D, D) bf16; b: (3, 1, D).
    Returns three (B, L, D) head-major activations (scale folded into slot 0)."""
    B, D, L = query.shape
    tl = _pick_tile(L, max_tile, 128)     # lane dim of the NCL input block
    in_bytes = query.dtype.itemsize
    flops = 2 * 3 * B * L * D * D
    bytes_accessed = (3 * B * L * D * (in_bytes + jnp.dtype(out_dtype).itemsize)
                      + 3 * D * D * 2 + 3 * D * 4)
    x_spec = pl.BlockSpec((None, D, tl), lambda bb, i: (bb, 0, i))
    o_spec = pl.BlockSpec((None, tl, D), lambda bb, i: (bb, i, 0))
    o_shape = jax.ShapeDtypeStruct((B, L, D), out_dtype)
    return pl.pallas_call(
        _qkv_proj_kernel,
        out_shape=(o_shape, o_shape, o_shape),
        grid=(B, L // tl),
        in_specs=[x_spec, x_spec, x_spec,
                  pl.BlockSpec((3, D, D), lambda bb, i: (0, 0, 0)),
                  pl.BlockSpec((3, 1, D), lambda bb, i: (0, 0, 0))],
        out_specs=(o_spec, o_spec, o_spec),
        compiler_params=pltpu.CompilerParams(
            dimension_semantics=("parallel", "parallel"),
            vmem_limit_bytes=min(32 * 1024 * 1024, _vmem_capacity_bytes() // 2)),
        cost_estimate=pl.CostEstimate(flops=int(flops), transcendentals=0,
                                      bytes_accessed=int(bytes_accessed)),
    )(query, key, value, w, b)


# ---------------------------------------------------------------------------
# Kernel 2: merge projection with the NLC->NCL transpose folded in.
#   x_ref: (tl, D_in) bf16 head-major; w_ref: (D_out, D_in) bf16;
#   b_ref: (D_out, 1) f32; o_ref: (D_out, tl) channels-first f32.
# ---------------------------------------------------------------------------
def _merge_kernel(x_ref, w_ref, b_ref, o_ref):
    y = jax.lax.dot_general(w_ref[...], x_ref[...].astype(jnp.bfloat16),
                            (((1,), (1,)), ((), ())),
                            preferred_element_type=jnp.float32)      # (D, tl)
    o_ref[...] = (y + b_ref[...]).astype(o_ref.dtype)


def merge_project_pallas(x, w, b, out_dtype=jnp.float32, max_tile=512):
    """x: (B, L, D) bf16 head-major -> (B, D, L) `out_dtype` channels-first."""
    B, L, D = x.shape
    tl = _pick_tile(L, max_tile, 128)     # lane dim of the NCL output block
    flops = 2 * B * L * D * D
    bytes_accessed = (B * L * D * (x.dtype.itemsize + jnp.dtype(out_dtype).itemsize)
                      + D * D * 2 + D * 4)
    return pl.pallas_call(
        _merge_kernel,
        out_shape=jax.ShapeDtypeStruct((B, D, L), out_dtype),
        grid=(B, L // tl),
        in_specs=[pl.BlockSpec((None, tl, D), lambda bb, i: (bb, i, 0)),
                  pl.BlockSpec((D, D), lambda bb, i: (0, 0)),
                  pl.BlockSpec((D, 1), lambda bb, i: (0, 0))],
        out_specs=pl.BlockSpec((None, D, tl), lambda bb, i: (bb, 0, i)),
        compiler_params=pltpu.CompilerParams(
            dimension_semantics=("parallel", "parallel"),
            vmem_limit_bytes=min(32 * 1024 * 1024, _vmem_capacity_bytes() // 2)),
        cost_estimate=pl.CostEstimate(flops=int(flops), transcendentals=0,
                                      bytes_accessed=int(bytes_accessed)),
    )(x, w, b)


# ---------------------------------------------------------------------------
# Kernel 3: multi-head attention, all heads per grid step, query dim tiled.
#   q_ref: (tq, H*dh) bf16 (1/sqrt(dh) pre-folded), k_ref/v_ref: (L, H*dh) bf16
#   o_ref: (tq, H*dh) bf16; optional p_ref: (H, tq, L) f32.
# ---------------------------------------------------------------------------
def _mha_kernel(q_ref, k_ref, v_ref, o_ref, *maybe_prob,
                num_heads, head_dim, valid_len, padded_len):
    p_ref = maybe_prob[0] if maybe_prob else None
    need_mask = valid_len < padded_len              # static (padding known at trace)
    for h in range(num_heads):                      # static unroll over heads
        sl = slice(h * head_dim, (h + 1) * head_dim)
        qh = q_ref[:, sl]                           # Ref-level head slices
        kh = k_ref[:, sl]
        vh = v_ref[:, sl]
        s = jax.lax.dot_general(qh, kh, (((1,), (1,)), ((), ())),
                                preferred_element_type=jnp.float32)   # (tq, L) f32
        if need_mask:                               # mask padded key columns
            col = jax.lax.broadcasted_iota(jnp.int32, s.shape, 1)
            s = jnp.where(col < valid_len, s, -1e30)
        m = jnp.max(s, axis=-1, keepdims=True)
        e = jnp.exp((s - m).astype(jnp.bfloat16))   # bf16 exponent -> EUP throughput
        denom = jnp.sum(e.astype(jnp.float32), axis=-1, keepdims=True)  # f32 row sum
        p = e * pl.reciprocal(denom, approx=True).astype(jnp.bfloat16)  # bf16 probs
        if p_ref is not None:
            p_ref[h] = p.astype(p_ref.dtype)
        o_ref[:, sl] = jnp.dot(p, vh,               # per-head store, no concatenate
                               preferred_element_type=jnp.float32).astype(o_ref.dtype)


def mha_attention_pallas(q, k, v, num_heads, valid_len, return_prob=False,
                         max_tile_q=None):
    """q/k/v: (B, L_pad, D) bf16 head-major (q pre-scaled) -> ((B, L_pad, D), prob?)."""
    B, L, D = q.shape
    dh = D // num_heads
    vmem_cap = _vmem_capacity_bytes()
    small_vmem = vmem_cap <= 64 * 1024 * 1024            # v7x-class TensorCore
    if max_tile_q is None:
        max_tile_q = 256 if small_vmem else 512
        if return_prob:                                   # (H, tq, L) f32 block is big
            max_tile_q = 128 if small_vmem else 256
    tq = _pick_tile(L, max_tile_q, 8)
    # Ensure >= 2 parallel programs so both v7x TensorCores get work.
    if B * (L // tq) < 2 and L >= 16:
        tq = _pick_tile(L, max(8, (L // 2) // 8 * 8), 8)

    kernel = functools.partial(_mha_kernel, num_heads=num_heads, head_dim=dh,
                               valid_len=valid_len, padded_len=L)
    itm = q.dtype.itemsize
    out_shape = [jax.ShapeDtypeStruct((B, L, D), q.dtype)]
    out_specs = [pl.BlockSpec((None, tq, D), lambda bb, i: (bb, i, 0))]
    flops = 4 * B * L * L * D                 # QK^T + PV per head
    transcendentals = B * num_heads * L * L   # exp
    bytes_accessed = 4 * B * L * D * itm
    if return_prob:
        # Kept only for API parity with the PyTorch module's self.prob; it
        # dominates HBM writeback at large L, so it is off by default.
        out_shape.append(jax.ShapeDtypeStruct((B, num_heads, L, L), jnp.float32))
        out_specs.append(
            pl.BlockSpec((None, num_heads, tq, L), lambda bb, i: (bb, 0, i, 0)))
        bytes_accessed += B * num_heads * L * L * 4

    res = pl.pallas_call(
        kernel,
        out_shape=tuple(out_shape),
        grid=(B, L // tq),
        in_specs=[
            pl.BlockSpec((None, tq, D), lambda bb, i: (bb, i, 0)),
            # K/V stay resident across the query-tile axis (constant block index).
            # TODO(synk): pipeline_mode=pl.Buffered(1) would halve their VMEM
            # footprint; left at the default double buffer for compile safety.
            # TODO(synk): for very large L (>= ~4k) switch to a KV-tile
            # "arbitrary" grid axis with online-softmax accumulators.
            pl.BlockSpec((None, L, D), lambda bb, i: (bb, 0, 0)),
            pl.BlockSpec((None, L, D), lambda bb, i: (bb, 0, 0)),
        ],
        out_specs=tuple(out_specs),
        compiler_params=pltpu.CompilerParams(
            dimension_semantics=("parallel", "parallel"),
            vmem_limit_bytes=(48 if small_vmem else 64) * 1024 * 1024),
        cost_estimate=pl.CostEstimate(flops=int(flops),
                                      transcendentals=int(transcendentals),
                                      bytes_accessed=int(bytes_accessed)),
    )(q, k, v)
    out = res[0]
    prob = res[1] if return_prob else None
    return out, prob


# ---------------------------------------------------------------------------
# Module wrapper: parameter setup + layout/scale folding done once at init.
# ---------------------------------------------------------------------------
class MultiHeadedAttentionPallas:
    def __init__(self, num_heads: int, d_model: int, key):
        assert d_model % num_heads == 0
        self.num_heads = num_heads
        self.d_model = d_model
        self.dim = d_model // num_heads
        # Conv1d(d_model, d_model, 1): weight (out, in), bias (out,), torch init.
        bound = 1.0 / math.sqrt(d_model)
        ks = jax.random.split(key, 8)
        u = lambda k, shape: jax.random.uniform(k, shape, jnp.float32, -bound, bound)
        self.wq, self.bq = u(ks[0], (d_model, d_model)), u(ks[1], (d_model,))
        self.wk, self.bk = u(ks[2], (d_model, d_model)), u(ks[3], (d_model,))
        self.wv, self.bv = u(ks[4], (d_model, d_model)), u(ks[5], (d_model,))
        self.wm, self.bm = u(ks[6], (d_model, d_model)), u(ks[7], (d_model,))
        self.prob = []

        # Head-major channel permutation: new channel j=(h,d) <- old c = d*H + h,
        # so the head split/merge needs no transpose.  Softmax 1/sqrt(dh) folded
        # into the Q projection (f32 masters, bf16 kernel copies).
        j = jnp.arange(d_model)
        perm = (j % self.dim) * num_heads + (j // self.dim)
        scale = 1.0 / math.sqrt(self.dim)
        wq_hm, bq_hm = self.wq.T[:, perm] * scale, self.bq[perm] * scale
        wk_hm, bk_hm = self.wk.T[:, perm], self.bk[perm]
        wv_hm, bv_hm = self.wv.T[:, perm], self.bv[perm]
        self.w_qkv = jnp.stack([wq_hm, wk_hm, wv_hm]).astype(jnp.bfloat16)  # (3,D,D) in-major
        self.b_qkv = jnp.stack([bq_hm, bk_hm, bv_hm])[:, None, :]           # (3,1,D)
        # Merge conv stored output-major with head-major input channels, so the
        # merge kernel contracts last dims and stores channels-first directly.
        self.w_merge = self.wm[:, perm].astype(jnp.bfloat16)                # (D_out, D_in)
        self.b_merge = self.bm[:, None]                                     # (D_out, 1)

    def __call__(self, query, key, value, return_prob=False):
        """query/key/value: (B, d_model, L) -> (B, d_model, L)."""
        B, D, L = query.shape
        assert D == self.d_model
        # Ragged keypoint counts: pad L to a multiple of 8; padded key columns
        # are masked in-kernel and padded rows are sliced off below.
        L_pad = _round_up(L, 8)
        if L_pad != L:
            pad = ((0, 0), (0, 0), (0, L_pad - L))
            query, key, value = (jnp.pad(a, pad) for a in (query, key, value))
        # NOTE: activations are cast to bf16 inside the projection kernel (one
        # f32 HBM read total); bf16 callers skip the cast entirely.
        qp, kp, vp = qkv_project_pallas(query, key, value, self.w_qkv, self.b_qkv)
        attn, prob = mha_attention_pallas(qp, kp, vp, self.num_heads,
                                          valid_len=L, return_prob=return_prob)
        if return_prob:
            self.prob.append(prob[:, :, :L, :L])
        y = merge_project_pallas(attn, self.w_merge, self.b_merge)  # (B, D, L_pad) f32
        return y[:, :, :L]


# ---------------------------------------------------------------------------
# Pure-JAX f32 reference (mirrors the PyTorch forward, channels-first).
# ---------------------------------------------------------------------------
def reference_forward(mod, query, key, value):
    def conv1x1(w, b, x):  # x: (B, D, L)
        return jnp.einsum('oi,bil->bol', w, x) + b[None, :, None]
    B = query.shape[0]
    dim, H = mod.dim, mod.num_heads
    qp = conv1x1(mod.wq, mod.bq, query).reshape(B, dim, H, -1)
    kp = conv1x1(mod.wk, mod.bk, key).reshape(B, dim, H, -1)
    vp = conv1x1(mod.wv, mod.bv, value).reshape(B, dim, H, -1)
    scores = jnp.einsum('bdhn,bdhm->bhnm', qp, kp) / (dim ** 0.5)
    prob = jax.nn.softmax(scores, axis=3)
    x = jnp.einsum('bhnm,bdhm->bdhn', prob, vp)
    x = x.reshape(B, dim * H, -1)
    return conv1x1(mod.wm, mod.bm, x), prob


if __name__ == "__main__":
    B, d_model, num_heads, L = 2, 32, 4, 16
    root = jax.random.PRNGKey(0)
    k_mod, kq, kk, kv = jax.random.split(root, 4)

    mod = MultiHeadedAttentionPallas(num_heads, d_model, k_mod)

    query = jax.random.normal(kq, (B, d_model, L), jnp.float32)
    key = jax.random.normal(kk, (B, d_model, L), jnp.float32)
    value = jax.random.normal(kv, (B, d_model, L), jnp.float32)

    # Fast path: no probability writeback.
    out = jax.block_until_ready(mod(query, key, value))
    ref_out, ref_prob = reference_forward(mod, query, key, value)
    assert out.shape == (B, d_model, L), out.shape
    assert jnp.allclose(out, ref_out, atol=2e-2, rtol=2e-2), \
        f"max err {jnp.max(jnp.abs(out - ref_out))}"

    # Optional prob path (parity with the PyTorch module's self.prob).
    out2 = jax.block_until_ready(mod(query, key, value, return_prob=True))
    prob = mod.prob[-1]
    assert prob.shape == (B, num_heads, L, L), prob.shape
    assert jnp.allclose(prob, ref_prob, atol=2e-2, rtol=2e-2), \
        f"prob max err {jnp.max(jnp.abs(prob - ref_prob))}"
    assert jnp.allclose(out2, ref_out, atol=2e-2, rtol=2e-2)

    # Ragged-L path: L not a multiple of 8 exercises the pad + key-mask path.
    Lr = 13
    qr = jax.random.normal(kq, (1, d_model, Lr), jnp.float32)
    kr = jax.random.normal(kk, (1, d_model, Lr), jnp.float32)
    vr = jax.random.normal(kv, (1, d_model, Lr), jnp.float32)
    out_r = jax.block_until_ready(mod(qr, kr, vr))
    ref_r, _ = reference_forward(mod, qr, kr, vr)
    assert out_r.shape == (1, d_model, Lr), out_r.shape
    assert jnp.allclose(out_r, ref_r, atol=2e-2, rtol=2e-2), \
        f"ragged max err {jnp.max(jnp.abs(out_r - ref_r))}"

    print("KERNEL_OK")
</pallas_src>

<mosaic_0001>
module attributes {stable_mosaic.version = 11 : i64} {
  func.func @_qkv_proj_kernel(%arg0: i32, %arg1: i32, %arg2: memref<1x32x16xf32, #tpu.memory_space<vmem>>, %arg3: memref<1x32x16xf32, #tpu.memory_space<vmem>>, %arg4: memref<1x32x16xf32, #tpu.memory_space<vmem>>, %arg5: memref<3x32x32xbf16, #tpu.memory_space<vmem>>, %arg6: memref<3x1x32xf32, #tpu.memory_space<vmem>>, %arg7: memref<1x16x32xbf16, #tpu.memory_space<vmem>>, %arg8: memref<1x16x32xbf16, #tpu.memory_space<vmem>>, %arg9: memref<1x16x32xbf16, #tpu.memory_space<vmem>>) attributes {dimension_semantics = [#tpu.dimension_semantics<parallel>, #tpu.dimension_semantics<parallel>], iteration_bounds = array<i64: 2, 1>, scalar_prefetch = 0 : i64, scratch_operands = 0 : i64, tpu.core_type = #tpu.core_type<tc>, window_params = [{transform_indices = @transform_0, window_bounds = array<i64: 1, 32, 16>}, {transform_indices = @transform_1, window_bounds = array<i64: 1, 32, 16>}, {transform_indices = @transform_2, window_bounds = array<i64: 1, 32, 16>}, {pipeline_mode = #tpu.pipeline_mode<synchronous>, transform_indices = @transform_3, window_bounds = array<i64: 3, 32, 32>}, {pipeline_mode = #tpu.pipeline_mode<synchronous>, transform_indices = @transform_4, window_bounds = array<i64: 3, 1, 32>}, {transform_indices = @transform_5, window_bounds = array<i64: 1, 16, 32>}, {transform_indices = @transform_6, window_bounds = array<i64: 1, 16, 32>}, {transform_indices = @transform_7, window_bounds = array<i64: 1, 16, 32>}]} {
    %c0 = arith.constant 0 : index
    %c0_0 = arith.constant 0 : index
    %c0_1 = arith.constant 0 : index
    %0 = vector.load %arg2[%c0, %c0_0, %c0_1] : memref<1x32x16xf32, #tpu.memory_space<vmem>>, vector<1x32x16xf32>
    %1 = vector.shape_cast %0 : vector<1x32x16xf32> to vector<32x16xf32>
    %2 = arith.truncf %1 : vector<32x16xf32> to vector<32x16xbf16>
    %c0_2 = arith.constant 0 : index
    %c0_3 = arith.constant 0 : index
    %c0_4 = arith.constant 0 : index
    %3 = vector.load %arg5[%c0_2, %c0_3, %c0_4] : memref<3x32x32xbf16, #tpu.memory_space<vmem>>, vector<1x32x32xbf16>
    %4 = vector.shape_cast %3 : vector<1x32x32xbf16> to vector<32x32xbf16>
    %cst = arith.constant dense<0.000000e+00> : vector<16x32xf32>
    %5 = tpu.matmul %2, %4, %cst {dimension_numbers = #tpu.dot_dimension_numbers<[0], [0], [1], [1], [0, 1, 1, 1], [], []>} : vector<32x16xbf16>, vector<32x32xbf16>, vector<16x32xf32> -> vector<16x32xf32>
    %c0_5 = arith.constant 0 : index
    %c0_6 = arith.constant 0 : index
    %c0_7 = arith.constant 0 : index
    %6 = vector.load %arg6[%c0_5, %c0_6, %c0_7] : memref<3x1x32xf32, #tpu.memory_space<vmem>>, vector<1x1x32xf32>
    %7 = vector.shape_cast %6 : vector<1x1x32xf32> to vector<1x32xf32>
    %8 = vector.broadcast %7 : vector<1x32xf32> to vector<16x32xf32>
    %9 = arith.addf %5, %8 : vector<16x32xf32>
    %10 = arith.truncf %9 : vector<16x32xf32> to vector<16x32xbf16>
    %c0_8 = arith.constant 0 : index
    %c0_9 = arith.constant 0 : index
    %c0_10 = arith.constant 0 : index
    %11 = vector.load %arg7[%c0_8, %c0_9, %c0_10] : memref<1x16x32xbf16, #tpu.memory_space<vmem>>, vector<1x16x32xbf16>
    %12 = vector.shape_cast %11 : vector<1x16x32xbf16> to vector<16x32xbf16>
    %13 = vector.shape_cast %10 : vector<16x32xbf16> to vector<1x16x32xbf16>
    tpu.vector_store %arg7[%c0_8, %c0_9, %c0_10], %13 {strides = array<i32>} : memref<1x16x32xbf16, #tpu.memory_space<vmem>>, vector<1x16x32xbf16>,
    %c0_11 = arith.constant 0 : index
    %c0_12 = arith.constant 0 : index
    %c0_13 = arith.constant 0 : index
    %14 = vector.load %arg3[%c0_11, %c0_12, %c0_13] : memref<1x32x16xf32, #tpu.memory_space<vmem>>, vector<1x32x16xf32>
    %15 = vector.shape_cast %14 : vector<1x32x16xf32> to vector<32x16xf32>
    %16 = arith.truncf %15 : vector<32x16xf32> to vector<32x16xbf16>
    %c1 = arith.constant 1 : index
    %c0_14 = arith.constant 0 : index
    %c0_15 = arith.constant 0 : index
    %17 = vector.load %arg5[%c1, %c0_14, %c0_15] : memref<3x32x32xbf16, #tpu.memory_space<vmem>>, vector<1x32x32xbf16>
    %18 = vector.shape_cast %17 : vector<1x32x32xbf16> to vector<32x32xbf16>
    %cst_16 = arith.constant dense<0.000000e+00> : vector<16x32xf32>
    %19 = tpu.matmul %16, %18, %cst_16 {dimension_numbers = #tpu.dot_dimension_numbers<[0], [0], [1], [1], [0, 1, 1, 1], [], []>} : vector<32x16xbf16>, vector<32x32xbf16>, vector<16x32xf32> -> vector<16x32xf32>
    %c1_17 = arith.constant 1 : index
    %c0_18 = arith.constant 0 : index
    %c0_19 = arith.constant 0 : index
    %20 = vector.load %arg6[%c1_17, %c0_18, %c0_19] : memref<3x1x32xf32, #tpu.memory_space<vmem>>, vector<1x1x32xf32>
    %21 = vector.shape_cast %20 : vector<1x1x32xf32> to vector<1x32xf32>
    %22 = vector.broadcast %21 : vector<1x32xf32> to vector<16x32xf32>
    %23 = arith.addf %19, %22 : vector<16x32xf32>
    %24 = arith.truncf %23 : vector<16x32xf32> to vector<16x32xbf16>
    %c0_20 = arith.constant 0 : index
    %c0_21 = arith.constant 0 : index
    %c0_22 = arith.constant 0 : index
    %25 = vector.load %arg8[%c0_20, %c0_21, %c0_22] : memref<1x16x32xbf16, #tpu.memory_space<vmem>>, vector<1x16x32xbf16>
    %26 = vector.shape_cast %25 : vector<1x16x32xbf16> to vector<16x32xbf16>
    %27 = vector.shape_cast %24 : vector<16x32xbf16> to vector<1x16x32xbf16>
    tpu.vector_store %arg8[%c0_20, %c0_21, %c0_22], %27 {strides = array<i32>} : memref<1x16x32xbf16, #tpu.memory_space<vmem>>, vector<1x16x32xbf16>,
    %c0_23 = arith.constant 0 : index
    %c0_24 = arith.constant 0 : index
    %c0_25 = arith.constant 0 : index
    %28 = vector.load %arg4[%c0_23, %c0_24, %c0_25] : memref<1x32x16xf32, #tpu.memory_space<vmem>>, vector<1x32x16xf32>
    %29 = vector.shape_cast %28 : vector<1x32x16xf32> to vector<32x16xf32>
    %30 = arith.truncf %29 : vector<32x16xf32> to vector<32x16xbf16>
    %c2 = arith.constant 2 : index
    %c0_26 = arith.constant 0 : index
    %c0_27 = arith.constant 0 : index
    %31 = vector.load %arg5[%c2, %c0_26, %c0_27] : memref<3x32x32xbf16, #tpu.memory_space<vmem>>, vector<1x32x32xbf16>
    %32 = vector.shape_cast %31 : vector<1x32x32xbf16> to vector<32x32xbf16>
    %cst_28 = arith.constant dense<0.000000e+00> : vector<16x32xf32>
    %33 = tpu.matmul %30, %32, %cst_28 {dimension_numbers = #tpu.dot_dimension_numbers<[0], [0], [1], [1], [0, 1, 1, 1], [], []>} : vector<32x16xbf16>, vector<32x32xbf16>, vector<16x32xf32> -> vector<16x32xf32>
    %c2_29 = arith.constant 2 : index
    %c0_30 = arith.constant 0 : index
    %c0_31 = arith.constant 0 : index
    %34 = vector.load %arg6[%c2_29, %c0_30, %c0_31] : memref<3x1x32xf32, #tpu.memory_space<vmem>>, vector<1x1x32xf32>
    %35 = vector.shape_cast %34 : vector<1x1x32xf32> to vector<1x32xf32>
    %36 = vector.broadcast %35 : vector<1x32xf32> to vector<16x32xf32>
    %37 = arith.addf %33, %36 : vector<16x32xf32>
    %38 = arith.truncf %37 : vector<16x32xf32> to vector<16x32xbf16>
    %c0_32 = arith.constant 0 : index
    %c0_33 = arith.constant 0 : index
    %c0_34 = arith.constant 0 : index
    %39 = vector.load %arg9[%c0_32, %c0_33, %c0_34] : memref<1x16x32xbf16, #tpu.memory_space<vmem>>, vector<1x16x32xbf16>
    %40 = vector.shape_cast %39 : vector<1x16x32xbf16> to vector<16x32xbf16>
    %41 = vector.shape_cast %38 : vector<16x32xbf16> to vector<1x16x32xbf16>
    tpu.vector_store %arg9[%c0_32, %c0_33, %c0_34], %41 {strides = array<i32>} : memref<1x16x32xbf16, #tpu.memory_space<vmem>>, vector<1x16x32xbf16>,
    return
  }
  func.func @transform_0(%arg0: i32, %arg1: i32) -> (i32, i32, i32) {
    %c0_i32 = arith.constant 0 : i32
    %c0_i32_0 = arith.constant 0 : i32
    return %arg0, %c0_i32, %arg1 : i32, i32, i32
  }
  func.func @transform_1(%arg0: i32, %arg1: i32) -> (i32, i32, i32) {
    %c0_i32 = arith.constant 0 : i32
    %c0_i32_0 = arith.constant 0 : i32
    return %arg0, %c0_i32, %arg1 : i32, i32, i32
  }
  func.func @transform_2(%arg0: i32, %arg1: i32) -> (i32, i32, i32) {
    %c0_i32 = arith.constant 0 : i32
    %c0_i32_0 = arith.constant 0 : i32
    return %arg0, %c0_i32, %arg1 : i32, i32, i32
  }
  func.func @transform_3(%arg0: i32, %arg1: i32) -> (i32, i32, i32) {
    %c0_i32 = arith.constant 0 : i32
    %c0_i32_0 = arith.constant 0 : i32
    %c0_i32_1 = arith.constant 0 : i32
    %c0_i32_2 = arith.constant 0 : i32
    return %c0_i32, %c0_i32_0, %c0_i32_1 : i32, i32, i32
  }
  func.func @transform_4(%arg0: i32, %arg1: i32) -> (i32, i32, i32) {
    %c0_i32 = arith.constant 0 : i32
    %c0_i32_0 = arith.constant 0 : i32
    %c0_i32_1 = arith.constant 0 : i32
    %c0_i32_2 = arith.constant 0 : i32
    return %c0_i32, %c0_i32_0, %c0_i32_1 : i32, i32, i32
  }
  func.func @transform_5(%arg0: i32, %arg1: i32) -> (i32, i32, i32) {
    %c0_i32 = arith.constant 0 : i32
    %c0_i32_0 = arith.constant 0 : i32
    return %arg0, %arg1, %c0_i32 : i32, i32, i32
  }
  func.func @transform_6(%arg0: i32, %arg1: i32) -> (i32, i32, i32) {
    %c0_i32 = arith.constant 0 : i32
    %c0_i32_0 = arith.constant 0 : i32
    return %arg0, %arg1, %c0_i32 : i32, i32, i32
  }
  func.func @transform_7(%arg0: i32, %arg1: i32) -> (i32, i32, i32) {
    %c0_i32 = arith.constant 0 : i32
    %c0_i32_0 = arith.constant 0 : i32
    return %arg0, %arg1, %c0_i32 : i32, i32, i32
  }
}

</mosaic_0001>

<bundles_post_ra>
// kernel: tpu_custom_call.1
= control target key start
LH: loop header
LB: loop body
LE: loop exit
PB: predicated region body
PF: predicated region fallthrough
CT: control target
= control target key end

     0   :  { %s1549_s0 = inlined_call_operand.vmem [shape: f32[2,32,16], index: 0, kind: input, shape index: {}]   ;;  %s1550_s1 = inlined_call_operand.vmem [shape: f32[2,32,16], index: 1, kind: input, shape index: {}]   ;;  %s1551_s2 = inlined_call_operand.vmem [shape: f32[2,32,16], index: 2, kind: input, shape index: {}]   ;;  %s1552_s3 = inlined_call_operand.vmem [shape: bf16[3,32,32], index: 3, kind: input, shape index: {}]   ;;  %s1553_s4 = inlined_call_operand.vmem [shape: f32[3,1,32], index: 4, kind: input, shape index: {}]   ;;  %s1554_s5 = inlined_call_operand.hbm [shape: bf16[2,16,32], index: 5, kind: output, shape index: {0}]   ;;  %s1555_s6 = inlined_call_operand.hbm [shape: bf16[2,16,32], index: 6, kind: output, shape index: {1}]   ;;  %s1556_s7 = inlined_call_operand.hbm [shape: bf16[2,16,32], index: 7, kind: output, shape index: {2}]  }
   0x1   :  { %1559 = sst [smem:[#allocation9_spill]] %s1549_s0 }
   0x2   :  { %1560 = sst [smem:[#allocation10_spill]] %s1550_s1 }
   0x3   :  { %1561 = sst [smem:[#allocation11_spill]] %s1551_s2 }
   0x4   :  { %13 = vsyncpa [#allocation3], 0 }
   0x5   :  { %15 = vsyncpa [#allocation3 + $0x1], 0 }
   0x6   :  { %16 = vsyncpa [#allocation5], 0 }
   0x7   :  { %18 = vsyncpa [#allocation5 + $0x1], 0  ;;  %s1292_s24 = smov 0   ;;  %s1294_s25 = smov 0  }
   0x8   :  { %s1296_s26 = smov 0   ;;  %s1298_s27 = smov 0  }
   0x9   :  { %s1300_s28 = smov 0   ;;  %s1302_s29 = smov 0  }
   0xa LB: > { %s937_s30 = sadd.s32 4294967295, %s1243_s29   ;;  %s1557_s8 = sadd.s32 4294967294, %s1243_s29   ;;  %s1243_s29 = sphi %s1302_s29, %s24_s29   ;;  %s1239_s28 = sphi %s1300_s28, %s1573_s28   ;;  %s1235_s27 = sphi %s1298_s27, %s1572_s27   ;;  %s1231_s26 = sphi %s1296_s26, %s1571_s26   ;;  %s1227_s25 = sphi %s1294_s25, %s1570_s25   ;;  %s1223_s24 = sphi %s1292_s24, %s1569_s24  }
   0xb   : > { %s36_s9 = sadd.s32 1, %s1239_s28  ;;  %s171_s10 = sadd.s32 1, %s1231_s26 }
   0xc   : > { %p38_p0 = scmp.ge.s32.totalorder %s36_s9, 2  ;;  %p181_p1 = scmp.ne.s32.totalorder %s1231_s26, %s1227_s25 }
   0xd   : > { %p182_p2 = scmp.eq.s32.totalorder %s937_s30, 1  ;;  %p187_p3 = scmp.ne.s32.totalorder %s1227_s25, %s1223_s24 }
   0xe   : > { %s1575_s9 = smov (%p38_p0, %s36_s9), 0  ;;  %p188_p5 = scmp.eq.s32.totalorder %s1557_s8, 1 }
   0xf   : > { %p1334_p4 = por %p182_p2, %p181_p1  ;;  %s166_s12 = ssub.s32 %s1239_s28, %s1575_s9 }
  0x10   : > { %p941_p6 = scmp.ge.s32.totalorder %s1243_s29, 1  ;;  %p169_p7 = scmp.eq.s32.totalorder %s166_s12, 0 }
  0x11   : > { %p1343_p8 = por %p188_p5, %p187_p3  ;;  %p301_p9 = scmp.lt.s32.totalorder %s1243_s29, 3 }
  0x12   : > { %s1349_s14 = scalar_select %p169_p7, %s1231_s26, %s171_s10  }
  0x13   : > { %p302_p10 = pnand %p941_p6, %p301_p9 }
  0x14   : > { %p362_p11 = scmp.lt.s32.totalorder (!%p302_p10), %s1235_s27, 1  ;;  %s1564_s0 = sld [smem:[#allocation9_spill]] (!%p302_p10) }
  0x15   : > { %305 = sbr.rel (%p302_p10) target bundleno = 393 (0x189), region = 40  ;;  %s1565_s1 = sld [smem:[#allocation10_spill]] (!%p302_p10) }
  0x16   : > { %s1566_s2 = sld [smem:[#allocation11_spill]] (!%p302_p10)  ;;  %s1558_s12 = sand.u32 (!%p302_p10), 1, %s1227_s25  }
  0x17   : > { %s1386_s15 = sshll.u32 (!%p302_p10), %s1558_s12, 3  ;;  %s1402_s23 = sshll.u32 (!%p302_p10), %s1235_s27, 7 }
  0x18   : > { %s1395_s20 = scalar_lea.vmem (!%p302_p10), [#allocation2], %s1386_s15  ;;  %s1410_s10 = sand.u32 (!%p302_p10), 1, %s937_s30  }
  0x19   : > { %s1247_s19 = smov (!%p302_p10), [#allocation2]  }
  0x1a   : > { %v1105_v0 = vld [vmem:[%s1552_s3 + $0x8] sm:$0xff]   ;;  %v1245_v1 = vmov 0.0   ;;  %s363_s17 = scalar_select %p362_p11, %s1235_s27, 1  ;;  %v1106_v2 = vld [vmem:[%s1552_s3 + $0x18] sm:$0xff]   ;;  %v1107_v3 = vld [vmem:[%s1552_s3] sm:$0xff]   ;;  %vm1246_vm0 = vmmov 0  }
  0x1b   : > { %1011 = vmatprep.subr.bf16.mxu0 %v1245_v1  ;;  %1019 = vmatprep.subr.bf16.mxu1 %v1245_v1  ;;  %v1108_v4 = vld [vmem:[%s1552_s3 + $0x10] sm:$0xff]   ;;  %vm435_vm1 = vcmask 261120   ;;  %v1109_v23 = vld [vmem:[%s1552_s3 + $0x28] sm:$0xff]   ;;  %v1110_v26 = vld [vmem:[%s1552_s3 + $0x20] sm:$0xff]   ;;  %vm488_vm2 = vcmask 257024   ;;  %s1567_s27 = sand.u32 1, %s1227_s25  }
  0x1c   : > { %1012 = vmatpush3.bf16.msra.mxu0 %v1105_v0  ;;  %s990_s22 = sshll.u32 %s363_s17, 5  ;;  %1020 = vmatpush3.bf16.msra.mxu1 %v1106_v2  ;;  %v951_v28 = vld [vmem:[%s1553_s4] ss:$0 sm:$0xff]  ;;  %v962_v29 = vld [vmem:[%s1553_s4 + $0x1] ss:$0 sm:$0xff]  ;;  %s1422_s17 = scalar_lea.hbm %s1554_s5, %s1402_s23 }
  0x1d   : > { %1013 = vmatprep.subr.bf16.mxu0 %v1245_v1  ;;  %1015 = vmatprep.mubr.msk.bf16.mxu0 %vm1246_vm0, %v1245_v1  ;;  %s369_s16 = scalar_lea.vmem %s1564_s0, %s990_s22  ;;  %s377_s8 = scalar_lea.vmem %s1565_s1, %s990_s22  ;;  %v1416_v43 = vld [vmem:[%s1553_s4 + $0x2] ss:$0 sm:$0xff] }
  0x1e   : > { %1021 = vmatprep.subr.bf16.mxu1 %v1245_v1  ;;  %1023 = vmatprep.mubr.msk.bf16.mxu1 %vm1246_vm0, %v1245_v1  ;;  %v390_v5 = vld [vmem:[%s369_s16] sm:$0xff]  ;;  %v391_v6 = vld [vmem:[%s369_s16 + $0x8] sm:$0xff]  ;;  %v392_v10 = vld [vmem:[%s369_s16 + $0x10] sm:$0xff]  ;;  %s385_s21 = scalar_lea.vmem %s1566_s2, %s990_s22  ;;  %s354_s22 = scalar_lea.vmem [#allocation4], %s1386_s15 }
  0x1f   : > { %v491_v7 = vld [vmem:[%s377_s8] sm:$0xff]  ;;  %v394_v8 = vpack.c.bf16 %v391_v6, %v390_v5  ;;  %v492_v9 = vld [vmem:[%s377_s8 + $0x8] sm:$0xff]  ;;  %v393_v11 = vld [vmem:[%s369_s16 + $0x18] sm:$0xff]  ;;  %s1428_s0 = scalar_lea.hbm %s1555_s6, %s1402_s23  ;;  %s1436_s16 = scalar_lea.sflag [#allocation3], %s1567_s27 }
  0x20   : > { %1014 = vmatpush3.bf16.msra.mxu0 %v1107_v3  ;;  %v495_v12 = vpack.c.bf16 %v492_v9, %v491_v7  ;;  %v493_v13 = vld [vmem:[%s377_s8 + $0x10] sm:$0xff]  ;;  %v494_v14 = vld [vmem:[%s377_s8 + $0x18] sm:$0xff]  ;;  %1022 = vmatpush3.bf16.msra.mxu1 %v1108_v4  ;;  %v395_v15 = vpack.c.bf16 %v393_v11, %v392_v10  ;;  %v592_v17 = vld [vmem:[%s385_s21] sm:$0xff]  ;;  %s737_s8 = sshll.u32 %s354_s22, 4  ;;  %s1115_s1 = sshll.u32 %s1247_s19, 4  ;;  %s1406_s8 = int_to_ptr.vmem [resolvable:$true] %s737_s8  ;;  %s1116_s1 = int_to_ptr.vmem [resolvable:$false] %s1115_s1 }
  0x21   : > { %1027 = vmatprep.subr.bf16.mxu0 %v1245_v1  ;;  %407 = vxpose.xlu0.c.b16.start [1/2] (short) (narrow) %v394_v8, 16  ;;  %v496_v16 = vpack.c.bf16 %v494_v14, %v493_v13  ;;  %v593_v18 = vld [vmem:[%s385_s21 + $0x8] sm:$0xff]  ;;  %v594_v20 = vld [vmem:[%s385_s21 + $0x10] sm:$0xff]  ;;  %v595_v21 = vld [vmem:[%s385_s21 + $0x18] sm:$0xff]  ;;  %s719_s21 = sshll.u32 %s1395_s20, 4  ;;  %s1117_s12 = scalar_lea.vmem %s1116_s1, 256  ;;  %s1399_s21 = int_to_ptr.vmem [resolvable:$true] %s719_s21 }
  0x22   : > { %510 = vxpose.xlu1.c.b16.start [1/2] (short) (narrow) %v495_v12, 16  ;;  %v596_v19 = vpack.c.bf16 %v593_v18, %v592_v17  ;;  %v597_v22 = vpack.c.bf16 %v595_v21, %v594_v20  ;;  %s1111_s18 = scalar_lea.vmem %s1399_s21, 128  ;;  %p1118_p1 = scmp.lt.s32.totalorder %s1399_s21, %s1116_s1 }
  0x23   : > { %p1112_p12 = scmp.ne.s32.totalorder %s1399_s21, %s1111_s18  ;;  %p1119_p2 = scmp.lt.s32.totalorder %s1117_s12, %s1111_s18 }
  0x25   : > { %408 = vxpose.xlu0.c.b16.end [2/2] (short) (narrow) %v395_v15, 16  ;;  %p1113_p13 = pnand %p1112_p12, %p1334_p4  ;;  %p1120_p3 = por %p1119_p2, %p1118_p1 }
  0x26   : > { %511 = vxpose.xlu1.c.b16.end [2/2] (short) (narrow) %v496_v16, 16 }
  0x27   : > { %p1114_p0 = pneg %p1113_p13 }
  0x29   : > { %611 = vxpose.xlu0.c.b16.start [1/2] (short) (narrow) %v596_v19, 16  ;;  %p1121_p5 = pnand %p1120_p3, %p1114_p0 }
  0x2d   : > { %612 = vxpose.xlu0.c.b16.end [2/2] (short) (narrow) %v597_v22, 16 }
  0x83   : > { %v415_v24 = vpop.trf.xlu0 }
  0x84   : > { %v518_v25 = vpop.trf.xlu1  ;;  %1016 = vmatmul.mubr.msk.bf16.vlgmr.msra.gmra.mxu0 %vm435_vm1, %v415_v24 }
  0x85   : > { %1028 = vmatpush3.bf16.msra.mxu0 %v1109_v23  ;;  %1024 = vmatmul.mubr.msk.bf16.vlgmr.msra.gmra.mxu1 %vm435_vm1, %v518_v25 }
  0x86   : > { %1029 = vmatprep.subr.bf16.mxu0 %v1245_v1  ;;  %1031 = vmatprep.mubr.msk.bf16.mxu0 %vm1246_vm0, %v1245_v1 }
  0x89   : > { %1030 = vmatpush3.bf16.msra.mxu0 %v1110_v26 }
  0x8b   : > { %v619_v27 = vpop.trf.xlu0 }
  0x8c   : > { %1032 = vmatmul.mubr.msk.bf16.vlgmr.msra.gmra.mxu0 %vm435_vm1, %v619_v27 }
 0x144   : > { %v473_v30 = vpop.f32.mrf.mxu0 }
 0x145   : > { %v474_v31 = vadd.f32 %v951_v28, %v473_v30  ;;  %v575_v32 = vpop.f32.mrf.mxu1 }
 0x146   : > { %v576_v33 = vadd.f32 %v962_v29, %v575_v32  ;;  %v1017_v34 = vpop.f32.mrf.mxu0 }
 0x147   : > { %v993_v35 = vpack.c.bf16 %v474_v31, %v474_v31  ;;  %v1025_v36 = vpop.f32.mrf.mxu1 }
 0x148   : > { %v995_v37 = vpack.c.bf16 %v576_v33, %v576_v33  ;;  %v476_v38 = vpop.f32.mrf.mxu0 }
 0x149   : > { %489 = vst.msk [vmem:[%s1395_s20] sm:$0xf] %vm488_vm2, %v993_v35  ;;  %v477_v39 = vadd.f32 %v951_v28, %v476_v38  ;;  %v578_v40 = vpop.f32.mrf.mxu1 }
 0x14a   : > { %590 = vst.msk [vmem:[%s354_s22] sm:$0xf] %vm488_vm2, %v995_v37  ;;  %v579_v41 = vadd.f32 %v962_v29, %v578_v40  ;;  %v1018_v42 = vpop.f32.mrf.mxu0 }
 0x14b   : > { %v994_v44 = vpack.c.bf16 %v477_v39, %v477_v39  ;;  %v1026_v45 = vpop.f32.mrf.mxu1 }
 0x14c   : > { %v996_v46 = vpack.c.bf16 %v579_v41, %v579_v41  ;;  %v676_v47 = vpop.f32.mrf.mxu0 }
 0x14d   : > { %490 = vst.msk [vmem:[%s1395_s20 + $0x4] sm:$0xf] %vm488_vm2, %v994_v44  ;;  %v677_v48 = vadd.f32 %v1416_v43, %v676_v47 }
 0x14e   : > { %591 = vst.msk [vmem:[%s354_s22 + $0x4] sm:$0xf] %vm488_vm2, %v996_v46  ;;  %v1033_v49 = vpop.f32.mrf.mxu0 }
 0x14f   : > { %1124 = shalt.err (!%p1121_p5)
}
 0x150   : > { %s1125_s20 = scalar_lea.hbm %s1422_s17, 128  ;;  %s1129_s27 = scalar_lea.hbm %s1554_s5, 256 }
 0x151   : > { %p1126_p6 = scmp.ne.s32.totalorder %s1422_s17, %s1125_s20  ;;  %p1130_p10 = scmp.lt.s32.totalorder %s1422_s17, %s1554_s5 }
 0x152   : > { %p1131_p11 = scmp.lt.s32.totalorder %s1129_s27, %s1125_s20 }
 0x153   : > { %p1127_p7 = pnand %p1126_p6, %p1334_p4 }
 0x154   : > { %p1132_p12 = por %p1131_p11, %p1130_p10 }
 0x155   : > { %p1128_p9 = pneg %p1127_p7 }
 0x157   : > { %p1133_p13 = pnand %p1132_p12, %p1128_p9 }
 0x159   : > { %1136 = shalt.err (!%p1133_p13)
}
 0x15a   : > { %s1248_s1 = smov 64   ;;  %s1249_s18 = smov 4   ;;  %v997_v50 = vpack.c.bf16 %v677_v48, %v677_v48 }
 0x15b   : > { %1035 = dma.vmem_to_hbm [thread:$0]  (%p1334_p4), %s1399_s21, 128, %s1422_s17, %s1436_s16, %s1248_s1, %s1248_s1, %s1249_s18  }
 0x15c   : > { %s699_s2 = scalar_lea.sflag [#allocation5], %s1410_s10  ;;  %s1137_s12 = scalar_lea.vmem %s1406_s8, 128 }
 0x15d   : > { %p1138_p0 = scmp.ne.s32.totalorder %s1406_s8, %s1137_s12  ;;  %s1250_s20 = smov [#allocation4]  }
 0x15e   : > { %s1141_s22 = sshll.u32 %s1250_s20, 4  ;;  %s1142_s22 = int_to_ptr.vmem [resolvable:$false] %s1141_s22 }
 0x15f   : > { %p1139_p1 = pnand %p1138_p0, %p1334_p4  ;;  %s1143_s30 = scalar_lea.vmem %s1142_s22, 256 }
 0x160   : > { %p1144_p3 = scmp.lt.s32.totalorder %s1406_s8, %s1142_s22  ;;  %p1145_p5 = scmp.lt.s32.totalorder %s1143_s30, %s1137_s12 }
 0x161   : > { %p1140_p2 = pneg %p1139_p1 }
 0x162   : > { %p1146_p6 = por %p1145_p5, %p1144_p3 }
 0x164   : > { %p1147_p7 = pnand %p1146_p6, %p1140_p2 }
 0x166   : > { %1150 = shalt.err (!%p1147_p7)
}
 0x167   : > { %s1151_s21 = scalar_lea.hbm %s1428_s0, 128  ;;  %s1155_s27 = scalar_lea.hbm %s1555_s6, 256 }
 0x168   : > { %p1152_p9 = scmp.ne.s32.totalorder %s1428_s0, %s1151_s21  ;;  %p1156_p12 = scmp.lt.s32.totalorder %s1428_s0, %s1555_s6 }
 0x169   : > { %p1157_p13 = scmp.lt.s32.totalorder %s1155_s27, %s1151_s21 }
 0x16a   : > { %p1153_p10 = pnand %p1152_p9, %p1334_p4 }
 0x16b   : > { %p1158_p0 = por %p1157_p13, %p1156_p12 }
 0x16c   : > { %p1154_p11 = pneg %p1153_p10 }
 0x16e   : > { %p1159_p1 = pnand %p1158_p0, %p1154_p11 }
 0x170   : > { %1162 = shalt.err (!%p1159_p1)
}
 0x171   : > { %1036 = dma.vmem_to_hbm [thread:$0]  (%p1334_p4), %s1406_s8, 128, %s1428_s0, %s699_s2, %s1248_s1, %s1248_s1, %s1249_s18   ;;  %v679_v51 = vpop.f32.mrf.mxu0 }
 0x172   : > { %s361_s12 = scalar_lea.vmem [#allocation6], %s1386_s15  ;;  %v680_v52 = vadd.f32 %v1416_v43, %v679_v51  ;;  %s1497_s17 = scalar_lea.hbm %s1556_s7, %s1402_s23 }
 0x173   : > { %s755_s22 = sshll.u32 %s361_s12, 4  ;;  %691 = vst.msk [vmem:[%s361_s12] sm:$0xf] %vm488_vm2, %v997_v50  ;;  %v1034_v53 = vpop.f32.mrf.mxu0  ;;  %s1251_s15 = smov [#allocation6]   ;;  %s1491_s22 = int_to_ptr.vmem [resolvable:$true] %s755_s22 }
 0x174   : > { %v998_v54 = vpack.c.bf16 %v680_v52, %v680_v52  ;;  %s1163_s0 = scalar_lea.vmem %s1491_s22, 128  ;;  %s1167_s8 = sshll.u32 %s1251_s15, 4  ;;  %s1168_s8 = int_to_ptr.vmem [resolvable:$false] %s1167_s8 }
 0x175   : > { %p1164_p2 = scmp.ne.s32.totalorder %s1491_s22, %s1163_s0  ;;  %s1169_s16 = scalar_lea.vmem %s1168_s8, 256 }
 0x176   : > { %692 = vst.msk [vmem:[%s361_s12 + $0x4] sm:$0xf] %vm488_vm2, %v998_v54  ;;  %p1170_p6 = scmp.lt.s32.totalorder %s1491_s22, %s1168_s8  ;;  %p1171_p7 = scmp.lt.s32.totalorder %s1169_s16, %s1163_s0 }
 0x177   : > { %p1165_p3 = pnand %p1164_p2, %p1334_p4 }
 0x178   : > { %p1172_p9 = por %p1171_p7, %p1170_p6 }
 0x179   : > { %p1166_p5 = pneg %p1165_p3 }
 0x17b   : > { %p1173_p10 = pnand %p1172_p9, %p1166_p5 }
 0x17d   : > { %1176 = shalt.err (!%p1173_p10)
}
 0x17e   : > { %s1177_s23 = scalar_lea.hbm %s1497_s17, 128  ;;  %s1181_s20 = scalar_lea.hbm %s1556_s7, 256 }
 0x17f   : > { %p1178_p11 = scmp.ne.s32.totalorder %s1497_s17, %s1177_s23  ;;  %p1182_p0 = scmp.lt.s32.totalorder %s1497_s17, %s1556_s7 }
 0x180   : > { %p1183_p1 = scmp.lt.s32.totalorder %s1181_s20, %s1177_s23 }
 0x181   : > { %p1179_p12 = pnand %p1178_p11, %p1334_p4 }
 0x182   : > { %p1184_p2 = por %p1183_p1, %p1182_p0 }
 0x183   : > { %p1180_p13 = pneg %p1179_p12 }
 0x185   : > { %p1185_p3 = pnand %p1184_p2, %p1180_p13 }
 0x187   : > { %1188 = shalt.err (!%p1185_p3)
}
 0x188   : > { %1037 = dma.vmem_to_hbm [thread:$0]  (%p1334_p4), %s1491_s22, 128, %s1497_s17, %s699_s2, %s1248_s1, %s1248_s1, %s1249_s18  }
 0x189 PF: > { %p1051_p5 = scmp.ge.s32.totalorder %s1243_s29, 2  ;;  %s770_s21 = sand.u32 1, %s1223_s24  }
 0x18a   : > { %s771_s0 = scalar_lea.sflag [#allocation3], %s770_s21 }
 0x18b   : > { %p1042_p6 = pnand %p1051_p5, %p1343_p8 }
 0x18d   : > { %p1043_p7 = pneg %p1042_p6 }
 0x18f   : > { %1214 = dma.done.wait (%p1043_p7), %s771_s0, 128  }
 0x190   : > { %1216 = vsyncadd (%p1043_p7), %s771_s0, 4294967168  ;;  %s1568_s11 = sadd.s32 4294967294, %s1243_s29  }
 0x191   : > { %s779_s15 = sand.u32 1, %s1568_s11  }
 0x192   : > { %s780_s8 = scalar_lea.sflag [#allocation5], %s779_s15 }
 0x193   : > { %1218 = dma.done.wait (%p1043_p7), %s780_s8, 256  }
 0x194   : > { %1220 = vsyncadd (%p1043_p7), %s780_s8, 4294967040  ;;  %s24_s29 = sadd.s32 1, %s1243_s29   ;;  %s1569_s24 = smov %s1227_s25 }
 0x195   : > { %p21_p4 = scmp.ge.s32.totalorder %s24_s29, 4   ;;  %s1570_s25 = smov %s1231_s26 }
 0x196   : > { %s1571_s26 = smov %s1349_s14  ;;  %s1572_s27 = smov %s1239_s28 }
 0x197   : > { %s1573_s28 = smov %s1575_s9  ;;  %23 = sbr.rel (!%p21_p4) target bundleno = 10 (0xa), region = 117 }
 0x19c   :  { %794 = vsyncpa [#allocation3], 1 }
 0x19d   :  { %796 = vsyncpa [#allocation3 + $0x1], 1 }
 0x19e   :  { %797 = vsyncpa [#allocation5], 1 }
 0x19f   :  { %799 = vsyncpa [#allocation5 + $0x1], 1 }

</bundles_post_ra>
